<compile_context>
chip_gen: v6e
topology: v6e:2x2x1
jax: 0.10.0
libtpu: 0.0.40
codegen_flags: <defaults>
</compile_context>

<pallas_src>
import functools
import math

import jax
import jax.numpy as jnp
from jax.experimental import pallas as pl
from jax.experimental.pallas import tpu as pltpu


def _self_attn_kernel(*refs, head, use_fr, approx_recip):
    if use_fr:
        (src_ref, value_ref, w1_ref, b1_ref, w2_ref, bias_ref, r1_ref,
         out_ref) = refs
    else:
        (src_ref, value_ref, w1_ref, b1_ref, w2_ref, bias_ref, out_ref) = refs
        r1_ref = None

    tq, D = src_ref.shape
    S = value_ref.shape[0]
    dh = D // head
    k_dim = w1_ref.shape[1] // head

    # Dense-synthesizer hidden layer, all heads fused into the MXU N dim.
    hidden = jnp.dot(src_ref[...], w1_ref[...],
                     preferred_element_type=jnp.float32) + b1_ref[...]
    hidden = jnp.maximum(hidden, 0.0).astype(w2_ref.dtype)      # (tq, head*k)

    value = value_ref[...]                                      # (S, D) compute dtype

    # Lane-dense direct per-head stores only when dh is a lane multiple.
    direct_store = (dh % 128 == 0)
    outs = []
    for h in range(head):
        lhs = hidden[:, h * k_dim:(h + 1) * k_dim]              # (tq, k)
        if use_fr:
            # fr term fused along K (wrapper concatenated rate1*R2 under W2).
            lhs = jnp.concatenate([lhs, r1_ref[h]], axis=-1)    # (tq, k+scale)

        scores = jnp.dot(lhs, w2_ref[h],
                         preferred_element_type=jnp.float32)    # (tq, S)
        # bias = rate0*b2 + additive mask (0 / -1e10), folded in the wrapper.
        # Note: additive -1e10 matches masked_fill whenever a row has >=1
        # unmasked key (exp underflows to 0 either way); fully-masked rows are
        # degenerate in both formulations.
        scores = scores + bias_ref[h]

        scores = scores - jnp.max(scores, axis=-1, keepdims=True)
        p = jnp.exp(scores)
        denom = jnp.sum(p, axis=-1, keepdims=True)
        if approx_recip:
            attn = p * pl.reciprocal(denom, approx=True)
        else:
            attn = p / denom

        out_h = jnp.dot(attn.astype(value.dtype),
                        value[:, h * dh:(h + 1) * dh],
                        preferred_element_type=jnp.float32)     # (tq, dh)
        if direct_store:
            out_ref[:, h * dh:(h + 1) * dh] = out_h.astype(out_ref.dtype)
        else:
            outs.append(out_h)

    if not direct_store:
        # Single lane-dense (tq, D) store, heads back in d_model order.
        out_ref[...] = jnp.concatenate(outs, axis=-1).astype(out_ref.dtype)


def _pick_tq(S, tq, compute_dtype):
    """Query-tile size: multiple of 16 (bf16) / 8, dividing S, capped at 256."""
    align = 16 if jnp.dtype(compute_dtype) == jnp.dtype(jnp.bfloat16) else 8
    if tq is not None and tq <= S and S % tq == 0 and tq % 8 == 0:
        return tq
    cap = min(S, 256)
    for a in (align, 8):
        for cand in range(cap, a - 1, -1):
            if S % cand == 0 and cand % a == 0:
                return cand
    return S


def _nbytes(shape, dtype):
    return math.prod(shape) * jnp.dtype(dtype).itemsize


@functools.partial(jax.jit,
                   static_argnames=("head", "use_fr", "tq", "compute_dtype",
                                    "out_dtype"))
def self_attention_pallas(src, mask, params, *, head, use_fr, tq=None,
                          compute_dtype=jnp.bfloat16, out_dtype=None):
    Wv, bv, W1, b1, W2, b2, R1, R2, rate_param = params
    B, S, D = src.shape
    k_dim = W1.shape[-1]
    scale_dim = R1.shape[-1]
    out_dtype = compute_dtype if out_dtype is None else out_dtype

    tq = _pick_tq(S, tq, compute_dtype)
    n_q = S // tq

    # Value projection as one large batched XLA GEMM (fully MXU-efficient);
    # streamed to the kernel per batch instead of recomputed / cached in VMEM.
    value = (src @ Wv + bv).astype(compute_dtype)                      # (B, S, D)

    # Per-sequence slices + rate folding (rate0 -> W2/b2, rate1 -> R2), then
    # fuse the fr factor R2 into the dense-score weight along K.
    w2_s = W2[:, :, :S]
    b2_s = b2[:, :S]
    if use_fr:
        rate = jax.nn.softmax(rate_param)
        w2_s = w2_s * rate[0]
        b2_s = b2_s * rate[0]
        r1_s = R1[:, :S, :].astype(compute_dtype)                      # (head, S, scale)
        r2_s = R2[:, :, :S] * rate[1]                                  # (head, scale, S)
        w2cat = jnp.concatenate([w2_s, r2_s], axis=1).astype(compute_dtype)
    else:
        w2cat = w2_s.astype(compute_dtype)                             # (head, Kc, S)
    Kc = w2cat.shape[1]

    # Heads fused into the hidden-projection N dimension.
    w1_all = W1.transpose(1, 0, 2).reshape(D, head * k_dim).astype(compute_dtype)
    b1_r = b1.reshape(1, head * k_dim).astype(jnp.float32)

    # Fold b2 and the additive mask into one per-batch (head, 1, S) f32 bias.
    mask_bias = jnp.where(mask, -1e10, 0.0).astype(jnp.float32)        # (B, S)
    bias = (b2_s.astype(jnp.float32)[None, :, None, :]
            + mask_bias[:, None, None, :])                             # (B, head, 1, S)

    src_c = src.astype(compute_dtype)

    in_specs = [
        pl.BlockSpec((None, tq, D), lambda b, q: (b, q, 0)),           # src q-tile
        pl.BlockSpec((None, S, D), lambda b, q: (b, 0, 0)),            # value (full keys / batch)
        pl.BlockSpec((D, head * k_dim), lambda b, q: (0, 0)),          # W1 fused (resident)
        pl.BlockSpec((1, head * k_dim), lambda b, q: (0, 0)),          # b1 fused
        pl.BlockSpec((head, Kc, S), lambda b, q: (0, 0, 0)),           # W2 (+rate1*R2) fused-K
        pl.BlockSpec((None, head, 1, S), lambda b, q: (b, 0, 0, 0)),   # b2 + mask bias
    ]
    operands = [src_c, value, w1_all, b1_r, w2cat, bias]
    if use_fr:
        in_specs.append(pl.BlockSpec((head, tq, scale_dim),
                                     lambda b, q: (0, q, 0)))          # R1 q-tile rows
        operands.append(r1_s)

    # VMEM budget: double-buffered block bytes + headroom, clamped to ~90% of
    # the chip's capacity (fallback assumes v7x's 64 MiB per TensorCore).
    est = 2 * (_nbytes((tq, D), compute_dtype)
               + _nbytes((S, D), compute_dtype)
               + _nbytes((D, head * k_dim), compute_dtype)
               + _nbytes((1, head * k_dim), jnp.float32)
               + _nbytes((head, Kc, S), compute_dtype)
               + _nbytes((head, 1, S), jnp.float32)
               + _nbytes((tq, D), out_dtype))
    if use_fr:
        est += 2 * _nbytes((head, tq, scale_dim), compute_dtype)
    try:
        vmem_cap = pltpu.get_tpu_info().vmem_capacity_bytes
    except Exception:
        vmem_cap = 64 * 1024 * 1024
    vmem_limit = int(min(int(vmem_cap * 0.9), max(est + (16 << 20), 32 << 20)))

    kernel = functools.partial(
        _self_attn_kernel, head=head, use_fr=use_fr,
        approx_recip=(jnp.dtype(compute_dtype) != jnp.dtype(jnp.float32)))

    out = pl.pallas_call(
        kernel,
        out_shape=jax.ShapeDtypeStruct((B, S, D), out_dtype),
        grid=(B, n_q),
        in_specs=in_specs,
        out_specs=pl.BlockSpec((None, tq, D), lambda b, q: (b, q, 0)),
        compiler_params=pltpu.CompilerParams(
            dimension_semantics=("parallel", "parallel"),
            vmem_limit_bytes=vmem_limit),
    )(*operands)

    # TODO(synk): nn.Dropout is identity in eval mode; train-mode dropout would
    # use pltpu.prng_seed / pltpu.prng_random_bits inside the kernel.
    return out


def self_attention_reference(src, mask, params, *, head, use_fr):
    """Pure-JAX f32 reference mirroring the PyTorch forward semantics."""
    Wv, bv, W1, b1, W2, b2, R1, R2, rate_param = params
    B, S, D = src.shape
    dh = D // head
    value = src @ Wv + bv
    value = value.reshape(B, S, head, dh).transpose(0, 2, 1, 3)               # (B,H,S,dh)
    hidden = jax.nn.relu(jnp.einsum("bsd,hdk->bhsk", src, W1) + b1[None, :, None, :])
    dense = jnp.einsum("bhsk,hkm->bhsm", hidden, W2[:, :, :S]) + b2[None, :, None, :S]
    if use_fr:
        rate = jax.nn.softmax(rate_param)
        fr = jnp.einsum("hmk,hkn->hmn", R1, R2)[:, :S, :S]
        dense = rate[0] * dense + rate[1] * fr[None]
    dense = jnp.where(mask[:, None, None, :], -1e10, dense)
    attn = jax.nn.softmax(dense, axis=-1)
    out = jnp.einsum("bhqk,bhkd->bhqd", attn, value)
    return out.transpose(0, 2, 1, 3).reshape(B, S, D)


if __name__ == "__main__":
    # config (small, consistent with the module; seq_len chosen to exercise
    # q-tiling: 2 query tiles of 16)
    batch, seq_len = 2, 32
    d_model, head, k_dim, max_len, scale = 32, 4, 16, 32, 8

    key = jax.random.PRNGKey(0)
    ks = jax.random.split(key, 10)
    src = jax.random.normal(ks[0], (batch, seq_len, d_model), jnp.float32)

    # deterministic parameter init (shapes from module __init__)
    Wv = jax.random.normal(ks[1], (d_model, d_model), jnp.float32) * 0.1
    bv = jax.random.normal(ks[2], (d_model,), jnp.float32) * 0.1
    W1 = jax.random.normal(ks[3], (head, d_model, k_dim), jnp.float32) * 0.1   # Dense_Attention w1
    b1 = jax.random.normal(ks[4], (head, k_dim), jnp.float32) * 0.1
    W2 = jax.random.normal(ks[5], (head, k_dim, max_len), jnp.float32) * 0.1   # Dense_Attention w2
    b2 = jax.random.normal(ks[6], (head, max_len), jnp.float32) * 0.1
    R1 = jax.random.normal(ks[7], (head, max_len, scale), jnp.float32) * 0.1   # FR_Attention factors
    R2 = jax.random.normal(ks[8], (head, scale, max_len), jnp.float32) * 0.1
    rate_param = jax.random.normal(ks[9], (2,), jnp.float32)                   # self.rate
    params = (Wv, bv, W1, b1, W2, b2, R1, R2, rate_param)

    # padding mask: True = masked out (same convention as masked_fill)
    lengths = jnp.array([seq_len, seq_len - 5])
    mask = jnp.arange(seq_len)[None, :] >= lengths[:, None]                    # (B, S) bool

    ref_fr = self_attention_reference(src, mask, params, head=head, use_fr=True)
    ref_nofr = self_attention_reference(src, mask, params, head=head, use_fr=False)

    # bf16 matmul operands / f32 accumulation, bf16 output (default fast path)
    out_bf16 = jax.block_until_ready(
        self_attention_pallas(src, mask, params, head=head, use_fr=True, tq=16))
    assert out_bf16.shape == (batch, seq_len, d_model)
    assert out_bf16.dtype == jnp.bfloat16
    assert jnp.allclose(out_bf16.astype(jnp.float32), ref_fr, atol=2e-2, rtol=2e-2), (
        float(jnp.max(jnp.abs(out_bf16.astype(jnp.float32) - ref_fr))))

    # f32 path (exact divide, f32 output): tight check against the f32 reference
    out_f32 = jax.block_until_ready(
        self_attention_pallas(src, mask, params, head=head, use_fr=True, tq=16,
                              compute_dtype=jnp.float32))
    assert out_f32.dtype == jnp.float32
    assert jnp.allclose(out_f32, ref_fr, atol=5e-3, rtol=5e-3), (
        float(jnp.max(jnp.abs(out_f32 - ref_fr))))

    # use_fr=False variant (R1/R2 operands dropped entirely)
    out_nofr = jax.block_until_ready(
        self_attention_pallas(src, mask, params, head=head, use_fr=False, tq=16,
                              compute_dtype=jnp.float32))
    assert jnp.allclose(out_nofr, ref_nofr, atol=5e-3, rtol=5e-3), (
        float(jnp.max(jnp.abs(out_nofr - ref_nofr))))

    print("KERNEL_OK")
</pallas_src>

<mosaic_0001>
module attributes {stable_mosaic.version = 11 : i64} {
  func.func @_self_attn_kernel(%arg0: i32, %arg1: i32, %arg2: memref<1x16x32xbf16, #tpu.memory_space<vmem>>, %arg3: memref<1x32x32xbf16, #tpu.memory_space<vmem>>, %arg4: memref<32x64xbf16, #tpu.memory_space<vmem>>, %arg5: memref<1x64xf32, #tpu.memory_space<vmem>>, %arg6: memref<4x24x32xbf16, #tpu.memory_space<vmem>>, %arg7: memref<1x4x1x32xf32, #tpu.memory_space<vmem>>, %arg8: memref<4x16x8xbf16, #tpu.memory_space<vmem>>, %arg9: memref<1x16x32xbf16, #tpu.memory_space<vmem>>) attributes {dimension_semantics = [#tpu.dimension_semantics<parallel>, #tpu.dimension_semantics<parallel>], iteration_bounds = array<i64: 2, 2>, scalar_prefetch = 0 : i64, scratch_operands = 0 : i64, tpu.core_type = #tpu.core_type<tc>, window_params = [{transform_indices = @transform_0, window_bounds = array<i64: 1, 16, 32>}, {transform_indices = @transform_1, window_bounds = array<i64: 1, 32, 32>}, {pipeline_mode = #tpu.pipeline_mode<synchronous>, transform_indices = @transform_2, window_bounds = array<i64: 32, 64>}, {pipeline_mode = #tpu.pipeline_mode<synchronous>, transform_indices = @transform_3, window_bounds = array<i64: 1, 64>}, {pipeline_mode = #tpu.pipeline_mode<synchronous>, transform_indices = @transform_4, window_bounds = array<i64: 4, 24, 32>}, {transform_indices = @transform_5, window_bounds = array<i64: 1, 4, 1, 32>}, {transform_indices = @transform_6, window_bounds = array<i64: 4, 16, 8>}, {transform_indices = @transform_7, window_bounds = array<i64: 1, 16, 32>}]} {
    %c0 = arith.constant 0 : index
    %c0_0 = arith.constant 0 : index
    %c0_1 = arith.constant 0 : index
    %0 = vector.load %arg2[%c0, %c0_0, %c0_1] : memref<1x16x32xbf16, #tpu.memory_space<vmem>>, vector<1x16x32xbf16>
    %1 = vector.shape_cast %0 : vector<1x16x32xbf16> to vector<16x32xbf16>
    %c0_2 = arith.constant 0 : index
    %c0_3 = arith.constant 0 : index
    %2 = vector.load %arg4[%c0_2, %c0_3] : memref<32x64xbf16, #tpu.memory_space<vmem>>, vector<32x64xbf16>
    %cst = arith.constant dense<0.000000e+00> : vector<16x64xf32>
    %3 = tpu.matmul %1, %2, %cst {dimension_numbers = #tpu.dot_dimension_numbers<[1], [0], [0], [1], [0, 0, 1, 1], [], []>} : vector<16x32xbf16>, vector<32x64xbf16>, vector<16x64xf32> -> vector<16x64xf32>
    %c0_4 = arith.constant 0 : index
    %c0_5 = arith.constant 0 : index
    %4 = vector.load %arg5[%c0_4, %c0_5] : memref<1x64xf32, #tpu.memory_space<vmem>>, vector<1x64xf32>
    %5 = vector.broadcast %4 : vector<1x64xf32> to vector<16x64xf32>
    %6 = arith.addf %3, %5 : vector<16x64xf32>
    %cst_6 = arith.constant 0.000000e+00 : f32
    %7 = vector.broadcast %cst_6 : f32 to vector<16x64xf32>
    %8 = arith.maximumf %6, %7 : vector<16x64xf32>
    %9 = arith.truncf %8 : vector<16x64xf32> to vector<16x64xbf16>
    %c0_7 = arith.constant 0 : index
    %c0_8 = arith.constant 0 : index
    %c0_9 = arith.constant 0 : index
    %10 = vector.load %arg3[%c0_7, %c0_8, %c0_9] : memref<1x32x32xbf16, #tpu.memory_space<vmem>>, vector<1x32x32xbf16>
    %11 = vector.shape_cast %10 : vector<1x32x32xbf16> to vector<32x32xbf16>
    %12 = vector.extract_strided_slice %9 {offsets = [0, 0], sizes = [16, 16], strides = [1, 1]} : vector<16x64xbf16> to vector<16x16xbf16>
    %c0_10 = arith.constant 0 : index
    %c0_11 = arith.constant 0 : index
    %c0_12 = arith.constant 0 : index
    %13 = vector.load %arg8[%c0_10, %c0_11, %c0_12] : memref<4x16x8xbf16, #tpu.memory_space<vmem>>, vector<1x16x8xbf16>
    %14 = vector.shape_cast %13 : vector<1x16x8xbf16> to vector<16x8xbf16>
    %15 = tpu.concatenate %12, %14 in 1 : vector<16x16xbf16>, vector<16x8xbf16> -> vector<16x24xbf16>
    %c0_13 = arith.constant 0 : index
    %c0_14 = arith.constant 0 : index
    %c0_15 = arith.constant 0 : index
    %16 = vector.load %arg6[%c0_13, %c0_14, %c0_15] : memref<4x24x32xbf16, #tpu.memory_space<vmem>>, vector<1x24x32xbf16>
    %17 = vector.shape_cast %16 : vector<1x24x32xbf16> to vector<24x32xbf16>
    %cst_16 = arith.constant dense<0.000000e+00> : vector<16x32xf32>
    %18 = tpu.matmul %15, %17, %cst_16 {dimension_numbers = #tpu.dot_dimension_numbers<[1], [0], [0], [1], [0, 0, 1, 1], [], []>} : vector<16x24xbf16>, vector<24x32xbf16>, vector<16x32xf32> -> vector<16x32xf32>
    %c0_17 = arith.constant 0 : index
    %c0_18 = arith.constant 0 : index
    %c0_19 = arith.constant 0 : index
    %c0_20 = arith.constant 0 : index
    %19 = vector.load %arg7[%c0_17, %c0_18, %c0_19, %c0_20] : memref<1x4x1x32xf32, #tpu.memory_space<vmem>>, vector<1x1x1x32xf32>
    %20 = vector.shape_cast %19 : vector<1x1x1x32xf32> to vector<1x32xf32>
    %21 = vector.broadcast %20 : vector<1x32xf32> to vector<16x32xf32>
    %22 = arith.addf %18, %21 : vector<16x32xf32>
    %cst_21 = arith.constant dense<0xFF800000> : vector<16xf32>
    %23 = vector.multi_reduction <maximumf>, %22, %cst_21 [1] : vector<16x32xf32> to vector<16xf32>
    %24 = vector.shape_cast %23 : vector<16xf32> to vector<16x1xf32>
    %25 = vector.broadcast %24 : vector<16x1xf32> to vector<16x32xf32>
    %26 = arith.subf %22, %25 : vector<16x32xf32>
    %27 = math.exp %26 : vector<16x32xf32>
    %cst_22 = arith.constant dense<0.000000e+00> : vector<16xf32>
    %28 = vector.multi_reduction <add>, %27, %cst_22 [1] : vector<16x32xf32> to vector<16xf32>
    %29 = vector.shape_cast %28 : vector<16xf32> to vector<16x1xf32>
    %30 = tpu.reciprocal %29 {approx = true} : vector<16x1xf32> -> vector<16x1xf32>
    %31 = vector.broadcast %30 : vector<16x1xf32> to vector<16x32xf32>
    %32 = arith.mulf %27, %31 : vector<16x32xf32>
    %33 = arith.truncf %32 : vector<16x32xf32> to vector<16x32xbf16>
    %34 = vector.extract_strided_slice %11 {offsets = [0, 0], sizes = [32, 8], strides = [1, 1]} : vector<32x32xbf16> to vector<32x8xbf16>
    %cst_23 = arith.constant dense<0.000000e+00> : vector<16x8xf32>
    %35 = tpu.matmul %33, %34, %cst_23 {dimension_numbers = #tpu.dot_dimension_numbers<[1], [0], [0], [1], [0, 0, 1, 1], [], []>} : vector<16x32xbf16>, vector<32x8xbf16>, vector<16x8xf32> -> vector<16x8xf32>
    %36 = vector.extract_strided_slice %9 {offsets = [0, 16], sizes = [16, 16], strides = [1, 1]} : vector<16x64xbf16> to vector<16x16xbf16>
    %c1 = arith.constant 1 : index
    %c0_24 = arith.constant 0 : index
    %c0_25 = arith.constant 0 : index
    %37 = vector.load %arg8[%c1, %c0_24, %c0_25] : memref<4x16x8xbf16, #tpu.memory_space<vmem>>, vector<1x16x8xbf16>
    %38 = vector.shape_cast %37 : vector<1x16x8xbf16> to vector<16x8xbf16>
    %39 = tpu.concatenate %36, %38 in 1 : vector<16x16xbf16>, vector<16x8xbf16> -> vector<16x24xbf16>
    %c1_26 = arith.constant 1 : index
    %c0_27 = arith.constant 0 : index
    %c0_28 = arith.constant 0 : index
    %40 = vector.load %arg6[%c1_26, %c0_27, %c0_28] : memref<4x24x32xbf16, #tpu.memory_space<vmem>>, vector<1x24x32xbf16>
    %41 = vector.shape_cast %40 : vector<1x24x32xbf16> to vector<24x32xbf16>
    %cst_29 = arith.constant dense<0.000000e+00> : vector<16x32xf32>
    %42 = tpu.matmul %39, %41, %cst_29 {dimension_numbers = #tpu.dot_dimension_numbers<[1], [0], [0], [1], [0, 0, 1, 1], [], []>} : vector<16x24xbf16>, vector<24x32xbf16>, vector<16x32xf32> -> vector<16x32xf32>
    %c0_30 = arith.constant 0 : index
    %c1_31 = arith.constant 1 : index
    %c0_32 = arith.constant 0 : index
    %c0_33 = arith.constant 0 : index
    %43 = vector.load %arg7[%c0_30, %c1_31, %c0_32, %c0_33] : memref<1x4x1x32xf32, #tpu.memory_space<vmem>>, vector<1x1x1x32xf32>
    %44 = vector.shape_cast %43 : vector<1x1x1x32xf32> to vector<1x32xf32>
    %45 = vector.broadcast %44 : vector<1x32xf32> to vector<16x32xf32>
    %46 = arith.addf %42, %45 : vector<16x32xf32>
    %cst_34 = arith.constant dense<0xFF800000> : vector<16xf32>
    %47 = vector.multi_reduction <maximumf>, %46, %cst_34 [1] : vector<16x32xf32> to vector<16xf32>
    %48 = vector.shape_cast %47 : vector<16xf32> to vector<16x1xf32>
    %49 = vector.broadcast %48 : vector<16x1xf32> to vector<16x32xf32>
    %50 = arith.subf %46, %49 : vector<16x32xf32>
    %51 = math.exp %50 : vector<16x32xf32>
    %cst_35 = arith.constant dense<0.000000e+00> : vector<16xf32>
    %52 = vector.multi_reduction <add>, %51, %cst_35 [1] : vector<16x32xf32> to vector<16xf32>
    %53 = vector.shape_cast %52 : vector<16xf32> to vector<16x1xf32>
    %54 = tpu.reciprocal %53 {approx = true} : vector<16x1xf32> -> vector<16x1xf32>
    %55 = vector.broadcast %54 : vector<16x1xf32> to vector<16x32xf32>
    %56 = arith.mulf %51, %55 : vector<16x32xf32>
    %57 = arith.truncf %56 : vector<16x32xf32> to vector<16x32xbf16>
    %58 = vector.extract_strided_slice %11 {offsets = [0, 8], sizes = [32, 8], strides = [1, 1]} : vector<32x32xbf16> to vector<32x8xbf16>
    %cst_36 = arith.constant dense<0.000000e+00> : vector<16x8xf32>
    %59 = tpu.matmul %57, %58, %cst_36 {dimension_numbers = #tpu.dot_dimension_numbers<[1], [0], [0], [1], [0, 0, 1, 1], [], []>} : vector<16x32xbf16>, vector<32x8xbf16>, vector<16x8xf32> -> vector<16x8xf32>
    %60 = vector.extract_strided_slice %9 {offsets = [0, 32], sizes = [16, 16], strides = [1, 1]} : vector<16x64xbf16> to vector<16x16xbf16>
    %c2 = arith.constant 2 : index
    %c0_37 = arith.constant 0 : index
    %c0_38 = arith.constant 0 : index
    %61 = vector.load %arg8[%c2, %c0_37, %c0_38] : memref<4x16x8xbf16, #tpu.memory_space<vmem>>, vector<1x16x8xbf16>
    %62 = vector.shape_cast %61 : vector<1x16x8xbf16> to vector<16x8xbf16>
    %63 = tpu.concatenate %60, %62 in 1 : vector<16x16xbf16>, vector<16x8xbf16> -> vector<16x24xbf16>
    %c2_39 = arith.constant 2 : index
    %c0_40 = arith.constant 0 : index
    %c0_41 = arith.constant 0 : index
    %64 = vector.load %arg6[%c2_39, %c0_40, %c0_41] : memref<4x24x32xbf16, #tpu.memory_space<vmem>>, vector<1x24x32xbf16>
    %65 = vector.shape_cast %64 : vector<1x24x32xbf16> to vector<24x32xbf16>
    %cst_42 = arith.constant dense<0.000000e+00> : vector<16x32xf32>
    %66 = tpu.matmul %63, %65, %cst_42 {dimension_numbers = #tpu.dot_dimension_numbers<[1], [0], [0], [1], [0, 0, 1, 1], [], []>} : vector<16x24xbf16>, vector<24x32xbf16>, vector<16x32xf32> -> vector<16x32xf32>
    %c0_43 = arith.constant 0 : index
    %c2_44 = arith.constant 2 : index
    %c0_45 = arith.constant 0 : index
    %c0_46 = arith.constant 0 : index
    %67 = vector.load %arg7[%c0_43, %c2_44, %c0_45, %c0_46] : memref<1x4x1x32xf32, #tpu.memory_space<vmem>>, vector<1x1x1x32xf32>
    %68 = vector.shape_cast %67 : vector<1x1x1x32xf32> to vector<1x32xf32>
    %69 = vector.broadcast %68 : vector<1x32xf32> to vector<16x32xf32>
    %70 = arith.addf %66, %69 : vector<16x32xf32>
    %cst_47 = arith.constant dense<0xFF800000> : vector<16xf32>
    %71 = vector.multi_reduction <maximumf>, %70, %cst_47 [1] : vector<16x32xf32> to vector<16xf32>
    %72 = vector.shape_cast %71 : vector<16xf32> to vector<16x1xf32>
    %73 = vector.broadcast %72 : vector<16x1xf32> to vector<16x32xf32>
    %74 = arith.subf %70, %73 : vector<16x32xf32>
    %75 = math.exp %74 : vector<16x32xf32>
    %cst_48 = arith.constant dense<0.000000e+00> : vector<16xf32>
    %76 = vector.multi_reduction <add>, %75, %cst_48 [1] : vector<16x32xf32> to vector<16xf32>
    %77 = vector.shape_cast %76 : vector<16xf32> to vector<16x1xf32>
    %78 = tpu.reciprocal %77 {approx = true} : vector<16x1xf32> -> vector<16x1xf32>
    %79 = vector.broadcast %78 : vector<16x1xf32> to vector<16x32xf32>
    %80 = arith.mulf %75, %79 : vector<16x32xf32>
    %81 = arith.truncf %80 : vector<16x32xf32> to vector<16x32xbf16>
    %82 = vector.extract_strided_slice %11 {offsets = [0, 16], sizes = [32, 8], strides = [1, 1]} : vector<32x32xbf16> to vector<32x8xbf16>
    %cst_49 = arith.constant dense<0.000000e+00> : vector<16x8xf32>
    %83 = tpu.matmul %81, %82, %cst_49 {dimension_numbers = #tpu.dot_dimension_numbers<[1], [0], [0], [1], [0, 0, 1, 1], [], []>} : vector<16x32xbf16>, vector<32x8xbf16>, vector<16x8xf32> -> vector<16x8xf32>
    %84 = vector.extract_strided_slice %9 {offsets = [0, 48], sizes = [16, 16], strides = [1, 1]} : vector<16x64xbf16> to vector<16x16xbf16>
    %c3 = arith.constant 3 : index
    %c0_50 = arith.constant 0 : index
    %c0_51 = arith.constant 0 : index
    %85 = vector.load %arg8[%c3, %c0_50, %c0_51] : memref<4x16x8xbf16, #tpu.memory_space<vmem>>, vector<1x16x8xbf16>
    %86 = vector.shape_cast %85 : vector<1x16x8xbf16> to vector<16x8xbf16>
    %87 = tpu.concatenate %84, %86 in 1 : vector<16x16xbf16>, vector<16x8xbf16> -> vector<16x24xbf16>
    %c3_52 = arith.constant 3 : index
    %c0_53 = arith.constant 0 : index
    %c0_54 = arith.constant 0 : index
    %88 = vector.load %arg6[%c3_52, %c0_53, %c0_54] : memref<4x24x32xbf16, #tpu.memory_space<vmem>>, vector<1x24x32xbf16>
    %89 = vector.shape_cast %88 : vector<1x24x32xbf16> to vector<24x32xbf16>
    %cst_55 = arith.constant dense<0.000000e+00> : vector<16x32xf32>
    %90 = tpu.matmul %87, %89, %cst_55 {dimension_numbers = #tpu.dot_dimension_numbers<[1], [0], [0], [1], [0, 0, 1, 1], [], []>} : vector<16x24xbf16>, vector<24x32xbf16>, vector<16x32xf32> -> vector<16x32xf32>
    %c0_56 = arith.constant 0 : index
    %c3_57 = arith.constant 3 : index
    %c0_58 = arith.constant 0 : index
    %c0_59 = arith.constant 0 : index
    %91 = vector.load %arg7[%c0_56, %c3_57, %c0_58, %c0_59] : memref<1x4x1x32xf32, #tpu.memory_space<vmem>>, vector<1x1x1x32xf32>
    %92 = vector.shape_cast %91 : vector<1x1x1x32xf32> to vector<1x32xf32>
    %93 = vector.broadcast %92 : vector<1x32xf32> to vector<16x32xf32>
    %94 = arith.addf %90, %93 : vector<16x32xf32>
    %cst_60 = arith.constant dense<0xFF800000> : vector<16xf32>
    %95 = vector.multi_reduction <maximumf>, %94, %cst_60 [1] : vector<16x32xf32> to vector<16xf32>
    %96 = vector.shape_cast %95 : vector<16xf32> to vector<16x1xf32>
    %97 = vector.broadcast %96 : vector<16x1xf32> to vector<16x32xf32>
    %98 = arith.subf %94, %97 : vector<16x32xf32>
    %99 = math.exp %98 : vector<16x32xf32>
    %cst_61 = arith.constant dense<0.000000e+00> : vector<16xf32>
    %100 = vector.multi_reduction <add>, %99, %cst_61 [1] : vector<16x32xf32> to vector<16xf32>
    %101 = vector.shape_cast %100 : vector<16xf32> to vector<16x1xf32>
    %102 = tpu.reciprocal %101 {approx = true} : vector<16x1xf32> -> vector<16x1xf32>
    %103 = vector.broadcast %102 : vector<16x1xf32> to vector<16x32xf32>
    %104 = arith.mulf %99, %103 : vector<16x32xf32>
    %105 = arith.truncf %104 : vector<16x32xf32> to vector<16x32xbf16>
    %106 = vector.extract_strided_slice %11 {offsets = [0, 24], sizes = [32, 8], strides = [1, 1]} : vector<32x32xbf16> to vector<32x8xbf16>
    %cst_62 = arith.constant dense<0.000000e+00> : vector<16x8xf32>
    %107 = tpu.matmul %105, %106, %cst_62 {dimension_numbers = #tpu.dot_dimension_numbers<[1], [0], [0], [1], [0, 0, 1, 1], [], []>} : vector<16x32xbf16>, vector<32x8xbf16>, vector<16x8xf32> -> vector<16x8xf32>
    %108 = tpu.concatenate %35, %59, %83, %107 in 1 : vector<16x8xf32>, vector<16x8xf32>, vector<16x8xf32>, vector<16x8xf32> -> vector<16x32xf32>
    %109 = arith.truncf %108 : vector<16x32xf32> to vector<16x32xbf16>
    %c0_63 = arith.constant 0 : index
    %c0_64 = arith.constant 0 : index
    %c0_65 = arith.constant 0 : index
    %110 = vector.load %arg9[%c0_63, %c0_64, %c0_65] : memref<1x16x32xbf16, #tpu.memory_space<vmem>>, vector<1x16x32xbf16>
    %111 = vector.shape_cast %110 : vector<1x16x32xbf16> to vector<16x32xbf16>
    %112 = vector.shape_cast %109 : vector<16x32xbf16> to vector<1x16x32xbf16>
    tpu.vector_store %arg9[%c0_63, %c0_64, %c0_65], %112 {strides = array<i32>} : memref<1x16x32xbf16, #tpu.memory_space<vmem>>, vector<1x16x32xbf16>,
    return
  }
  func.func @transform_0(%arg0: i32, %arg1: i32) -> (i32, i32, i32) {
    %c0_i32 = arith.constant 0 : i32
    %c0_i32_0 = arith.constant 0 : i32
    return %arg0, %arg1, %c0_i32 : i32, i32, i32
  }
  func.func @transform_1(%arg0: i32, %arg1: i32) -> (i32, i32, i32) {
    %c0_i32 = arith.constant 0 : i32
    %c0_i32_0 = arith.constant 0 : i32
    %c0_i32_1 = arith.constant 0 : i32
    return %arg0, %c0_i32, %c0_i32_0 : i32, i32, i32
  }
  func.func @transform_2(%arg0: i32, %arg1: i32) -> (i32, i32) {
    %c0_i32 = arith.constant 0 : i32
    %c0_i32_0 = arith.constant 0 : i32
    %c0_i32_1 = arith.constant 0 : i32
    return %c0_i32, %c0_i32_0 : i32, i32
  }
  func.func @transform_3(%arg0: i32, %arg1: i32) -> (i32, i32) {
    %c0_i32 = arith.constant 0 : i32
    %c0_i32_0 = arith.constant 0 : i32
    %c0_i32_1 = arith.constant 0 : i32
    return %c0_i32, %c0_i32_0 : i32, i32
  }
  func.func @transform_4(%arg0: i32, %arg1: i32) -> (i32, i32, i32) {
    %c0_i32 = arith.constant 0 : i32
    %c0_i32_0 = arith.constant 0 : i32
    %c0_i32_1 = arith.constant 0 : i32
    %c0_i32_2 = arith.constant 0 : i32
    return %c0_i32, %c0_i32_0, %c0_i32_1 : i32, i32, i32
  }
  func.func @transform_5(%arg0: i32, %arg1: i32) -> (i32, i32, i32, i32) {
    %c0_i32 = arith.constant 0 : i32
    %c0_i32_0 = arith.constant 0 : i32
    %c0_i32_1 = arith.constant 0 : i32
    %c0_i32_2 = arith.constant 0 : i32
    return %arg0, %c0_i32, %c0_i32_0, %c0_i32_1 : i32, i32, i32, i32
  }
  func.func @transform_6(%arg0: i32, %arg1: i32) -> (i32, i32, i32) {
    %c0_i32 = arith.constant 0 : i32
    %c0_i32_0 = arith.constant 0 : i32
    %c0_i32_1 = arith.constant 0 : i32
    return %c0_i32, %arg1, %c0_i32_0 : i32, i32, i32
  }
  func.func @transform_7(%arg0: i32, %arg1: i32) -> (i32, i32, i32) {
    %c0_i32 = arith.constant 0 : i32
    %c0_i32_0 = arith.constant 0 : i32
    return %arg0, %arg1, %c0_i32 : i32, i32, i32
  }
}

</mosaic_0001>

<bundles_post_ra>
// kernel: self_attention_pallas.1
= control target key start
LH: loop header
LB: loop body
LE: loop exit
PB: predicated region body
PF: predicated region fallthrough
CT: control target
= control target key end

     0   :  { %s2176_s0 = inlined_call_operand.vmem [shape: bf16[2,32,32], index: 0, kind: input, shape index: {}]   ;;  %s2177_s1 = inlined_call_operand.vmem [shape: bf16[2,32,32], index: 1, kind: input, shape index: {}]   ;;  %s2178_s2 = inlined_call_operand.vmem [shape: bf16[32,64], index: 2, kind: input, shape index: {}]   ;;  %s2179_s3 = inlined_call_operand.vmem [shape: f32[1,64], index: 3, kind: input, shape index: {}]   ;;  %s2180_s4 = inlined_call_operand.vmem [shape: bf16[4,24,32], index: 4, kind: input, shape index: {}]   ;;  %s2181_s5 = inlined_call_operand.vmem [shape: f32[2,4,1,32], index: 5, kind: input, shape index: {}]   ;;  %s2182_s6 = inlined_call_operand.vmem [shape: bf16[4,32,8], index: 6, kind: input, shape index: {}]   ;;  %s2183_s7 = inlined_call_operand.hbm [shape: bf16[2,32,32], index: 7, kind: output, shape index: {}]  }
   0x1   :  { %2186 = sst [smem:[#allocation8_spill]] %s2178_s2 }
   0x2   :  { %2187 = sst [smem:[#allocation9_spill]] %s2182_s6 }
   0x3   :  { %12 = vsyncpa [#allocation4], 0 }
   0x4   :  { %14 = vsyncpa [#allocation4 + $0x1], 0  ;;  %s1830_s24 = smov 0   ;;  %s1832_s25 = smov 0  }
   0x5   :  { %s1834_s26 = smov 0   ;;  %s1836_s27 = smov 0  }
   0x6   :  { %s1838_s28 = smov 0   ;;  %s1840_s29 = smov 0  }
   0x7   :  { %s1842_s30 = smov 0   ;;  %s1844_s8 = smov 0  }
   0x8   :  { %s1846_s9 = smov 0   ;;  %s1848_s10 = smov 0  }
   0x9 LB: > { %s1328_s11 = sadd.s32 4294967295, %s1775_s10   ;;  %s1329_s12 = sadd.s32 4294967294, %s1775_s10   ;;  %s1775_s10 = sphi %s1848_s10, %s20_s10   ;;  %s1771_s9 = sphi %s1846_s9, %s2205_s9   ;;  %s1767_s8 = sphi %s1844_s8, %s2204_s8   ;;  %s1763_s30 = sphi %s1842_s30, %s2203_s30   ;;  %s1759_s29 = sphi %s1840_s29, %s2202_s29   ;;  %s1755_s28 = sphi %s1838_s28, %s2201_s28   ;;  %s1751_s27 = sphi %s1836_s27, %s2200_s27   ;;  %s1747_s26 = sphi %s1834_s26, %s2199_s26   ;;  %s1743_s25 = sphi %s1832_s25, %s2198_s25   ;;  %s1739_s24 = sphi %s1830_s24, %s2197_s24  }
   0xa   : > { %s29_s13 = sadd.s32 1, %s1767_s8  ;;  %s32_s14 = sadd.s32 1, %s1771_s9 }
   0xb   : > { %p30_p0 = scmp.ge.s32.totalorder %s29_s13, 2  ;;  %s182_s15 = sadd.s32 1, %s1755_s28 }
   0xc   : > { %p189_p1 = scmp.ne.s32.totalorder %s1755_s28, %s1751_s27  ;;  %p190_p2 = scmp.eq.s32.totalorder %s1775_s10, 0 }
   0xd   : > { %s2207_s13 = smov (%p30_p0, %s29_s13), 0  ;;  %s2209_s14 = smov (!%p30_p0, %s32_s14), %s1771_s9 }
   0xe   : > { %2188 = sst [smem:[#allocation6_spill]] %s2207_s13  ;;  %s179_s16 = ssub.s32 %s1767_s8, %s2207_s13 }
   0xf   : > { %p1893_p3 = por %p190_p2, %p189_p1  ;;  %p34_p4 = scmp.ge.s32.totalorder %s2209_s14, 2 }
  0x10   : > { %p180_p5 = scmp.eq.s32.totalorder %s179_s16, 0  ;;  %s210_s18 = sadd.s32 1, %s1747_s26 }
  0x11   : > { %p220_p6 = scmp.ne.s32.totalorder %s1747_s26, %s1743_s25  ;;  %s2211_s14 = smov (%p34_p4, %s2209_s14), 0 }
  0x12   : > { %2190 = sst [smem:[#allocation7_spill]] %s2211_s14  ;;  %s205_s20 = ssub.s32 %s1771_s9, %s2211_s14 }
  0x13   : > { %s1903_s19 = scalar_select %p180_p5, %s1755_s28, %s182_s15  }
  0x14   : > { %p221_p7 = scmp.eq.s32.totalorder %s1328_s11, 3  ;;  %s207_s21 = sor.u32 %s205_s20, %s179_s16 }
  0x15   : > { %p226_p8 = scmp.ne.s32.totalorder %s1743_s25, %s1739_s24  ;;  %p208_p9 = scmp.eq.s32.totalorder %s207_s21, 0 }
  0x16   : > { %p1909_p10 = por %p221_p7, %p220_p6  ;;  %p227_p11 = scmp.eq.s32.totalorder %s1329_s12, 3 }
  0x17   : > { %s1914_s23 = scalar_select %p208_p9, %s1747_s26, %s210_s18  }
  0x18   : > { %p1916_p12 = por %p227_p11, %p226_p8  ;;  %p1331_p13 = scmp.ge.s32.totalorder %s1775_s10, 4 }
  0x1a   : > { %252 = sbr.rel (%p1331_p13) target bundleno = 43 (0x2b), region = 28 }
  0x1f   : > { %283 = sbr.rel (!%p1893_p3) target bundleno = 43 (0x2b), region = 44  ;;  %s285_s11 = sand.u32 (%p1893_p3), 1, %s1755_s28  }
  0x20   : > { %s1401_s15 = sshll.u32 (%p1893_p3), %s1767_s8, 3  ;;  %s1332_s16 = sshll.u32 (%p1893_p3), %s285_s11, 5 }
  0x21   : > { %s2193_s6 = sld [smem:[#allocation9_spill]] (%p1893_p3)  ;;  %s287_s18 = scalar_lea.vmem (%p1893_p3), [#allocation2], %s1332_s16 }
  0x27   : > { %s290_s12 = scalar_lea.vmem %s2193_s6, %s1401_s15 }
  0x28   : > { %v307_v0 = vld [vmem:[%s290_s12] sm:$0xff]   ;;  %v311_v1 = vld [vmem:[%s290_s12 + $0x10] sm:$0xff]  }
  0x29   : > { %v315_v2 = vld [vmem:[%s290_s12 + $0x20] sm:$0xff]   ;;  %308 = vst [vmem:[%s287_s18] sm:$0xff] %v307_v0   ;;  %312 = vst [vmem:[%s287_s18 + $0x8] sm:$0xff] %v311_v1   ;;  %v319_v3 = vld [vmem:[%s290_s12 + $0x30] sm:$0xff]  }
  0x2a   : > { %316 = vst [vmem:[%s287_s18 + $0x10] sm:$0xff] %v315_v2   ;;  %320 = vst [vmem:[%s287_s18 + $0x18] sm:$0xff] %v319_v3  }
  0x2b PF: > { %p1335_p0 = scmp.ge.s32.totalorder %s1775_s10, 1  ;;  %p361_p1 = scmp.lt.s32.totalorder %s1775_s10, 5 }
  0x2d   : > { %p362_p2 = pnand %p1335_p0, %p361_p1 }
  0x2e   : > { %s2194_s2 = sld [smem:[#allocation8_spill]] (!%p362_p2)  ;;  %s1941_s20 = sshll.u32 (!%p362_p2), %s1759_s29, 1 }
  0x2f   : > { %365 = sbr.rel (%p362_p2) target bundleno = 1283 (0x503), region = 85  ;;  %p418_p3 = scmp.lt.s32.totalorder (!%p362_p2), %s1763_s30, 1 }
  0x30   : > { %p420_p4 = scmp.lt.s32.totalorder (!%p362_p2), %s1941_s20, 3  ;;  %s368_s21 = sand.u32 (!%p362_p2), 1, %s1751_s27  }
  0x31   : > { %s1336_s11 = sshll.u32 (!%p362_p2), %s368_s21, 5  ;;  %s1779_s14 = smov (!%p362_p2), 16  }
  0x32   : > { %s1957_s16 = scalar_lea.vmem (!%p362_p2), [#allocation2], %s1336_s11  ;;  %s1780_s21 = smov (!%p362_p2), 96  }
  0x33   : > { %s1782_s11 = smov (!%p362_p2), 80  }
  0x34   : > { %v1618_v4 = vld [vmem:[%s2194_s2 + $0x8] sm:$0xff]   ;;  %v1777_v5 = vmov 0.0   ;;  %v1619_v6 = vld [vmem:[%s2194_s2] sm:$0xff]   ;;  %vm1778_vm0 = vmmov 0   ;;  %s1950_s12 = scalar_select %p418_p3, %s1763_s30, 1  ;;  %vm469_vm1 = vcmask 261120  }
  0x35   : > { %1432 = vmatprep.subr.bf16.mxu0 %v1777_v5  ;;  %1440 = vmatprep.subr.bf16.mxu1 %v1777_v5  ;;  %s421_s18 = scalar_select %p420_p4, %s1941_s20, 3  ;;  %v1621_v7 = vld [vmem:[%s1957_s16] sm:$0xff]   ;;  %v1622_v9 = vld [vmem:[%s2180_s4 + $0x8] ss:$0 sps:$4 sm:$0xff]   ;;  %vm556_vm2 = vcmask 1043456   ;;  %vm530_vm3 = vcmask 130048  }
  0x36   : > { %1433 = vmatpush3.bf16.msra.mxu0 %v1618_v4  ;;  %1436 = vmatprep.mubr.msk.bf16.mxu0 %vm1778_vm0, %v1777_v5  ;;  %s1339_s17 = sshll.u32 %s1950_s12, 2  ;;  %v558_v10 = vsel %vm556_vm2, %v1622_v9, 0  ;;  %v1623_v11 = vld [vmem:[%s1957_s16 + $0x8] sm:$0xff]   ;;  %v1624_v12 = vld [vmem:[%s2180_s4] sm:$0xff]   ;;  %v1627_v20 = vld [vmem:[%s2180_s4 + $0x14] ss:$0 sps:$4 sm:$0xff]  }
  0x37   : > { %1434 = vmatprep.subr.bf16.mxu0 %v1777_v5  ;;  %1444 = vmatprep.mubr.msk.bf16.mxu1 %vm1778_vm0, %v1777_v5  ;;  %s423_s29 = sadd.s32 %s1339_s17, %s421_s18  ;;  %v1344_v13 = vld [vmem:[%s2179_s3] ss:$0 sm:$0xff]  ;;  %vm553_vm4 = vcmask 195584   ;;  %v720_v25 = vsel %vm556_vm2, %v1627_v20, 0  ;;  %s1781_s18 = smov 112   ;;  %v1625_v27 = vld [vmem:[%s1957_s16 + $0x10] sm:$0xff]  }
  0x38   : > { %s1340_s15 = sshll.u32 %s423_s29, 2  ;;  %528 = vrot.lane.b32.xlu0 %v1621_v7, %s1779_s14  ;;  %1441 = vmatpush3.bf16.msra.mxu1 %v558_v10  ;;  %v1628_v28 = vld [vmem:[%s2180_s4 + $0xc] sm:$0xff]   ;;  %v1626_v29 = vld [vmem:[%s1957_s16 + $0x18] sm:$0xff]   ;;  %v1629_v30 = vld [vmem:[%s2180_s4 + $0x20] ss:$0 sps:$4 sm:$0xff]   ;;  %s2031_s27 = scalar_lea.vmem %s2181_s5, %s1339_s17  ;;  %vm1170_vm5 = vcmask 64512  }
  0x39   : > { %s425_s6 = scalar_lea.vmem %s2176_s0, %s1340_s15  ;;  %1442 = vmatprep.subr.bf16.mxu1 %v1777_v5  ;;  %691 = vrot.lane.b32.xlu1 %v1623_v11, %s1779_s14  ;;  %v875_v33 = vsel %vm556_vm2, %v1629_v30, 0  ;;  %v1630_v35 = vld [vmem:[%s2180_s4 + $0x18] sm:$0xff]   ;;  %v1631_v36 = vld [vmem:[%s2180_s4 + $0x2c] ss:$0 sps:$4 sm:$0xff]   ;;  %v1632_v41 = vld [vmem:[%s2180_s4 + $0x24] sm:$0xff]   ;;  %s1402_s16 = sshll.u32 %s1950_s12, 4 }
  0x3a   : > { %1435 = vmatpush3.bf16.msra.mxu0 %v1619_v6  ;;  %v1620_v8 = vld [vmem:[%s425_s6] sm:$0xff]   ;;  %v1030_v39 = vsel %vm556_vm2, %v1631_v36, 0  ;;  %s431_s17 = scalar_lea.vmem %s2177_s1, %s1402_s16  ;;  %s1783_s12 = smov 120   ;;  %vm1185_vm6 = vcmask 257024  }
  0x3b   : > { %1448 = vmatprep.subr.bf16.mxu0 %v1777_v5  ;;  %v1350_v45 = vld [vmem:[%s2031_s27] ss:$0 sm:$0xff]  ;;  %v2040_v54 = vld [vmem:[%s431_s17 + $0x8] sm:$0xff]   ;;  %v1364_v56 = vld [vmem:[%s2031_s27 + $0x1] ss:$0 sm:$0xff]  ;;  %s1784_s6 = smov 104  }
  0x3c   : > { %1443 = vmatpush3.bf16.msra.mxu1 %v1624_v12  ;;  %v2044_v55 = vld [vmem:[%s431_s17] sm:$0xff]   ;;  %s414_s29 = sand.u32 1, %s1743_s25  }
  0x3d   : > { %1437 = vmatmul.mubr.msk.bf16.vlgmr.msra.gmra.mxu0 %vm469_vm1, %v1620_v8  ;;  %1456 = vmatprep.subr.bf16.mxu1 %v1777_v5  ;;  %v1376_v0 = vld [vmem:[%s2031_s27 + $0x2] ss:$0 sm:$0xff]  ;;  %v1388_v10 = vld [vmem:[%s2031_s27 + $0x3] ss:$0 sm:$0xff]  ;;  %s1337_s15 = sshll.u32 %s414_s29, 3  ;;  %s1397_s27 = sshll.u32 %s1763_s30, 2 }
  0x3e   : > { %1452 = vmatprep.mubr.msk.bf16.mxu0 %vm1778_vm0, %v1777_v5  ;;  %1449 = vmatpush3.bf16.msra.mxu0 %v2040_v54  ;;  %s1201_s16 = sadd.s32 %s1397_s27, %s1941_s20 }
  0x3f   : > { %1450 = vmatprep.subr.bf16.mxu0 %v1777_v5 }
  0x42   : > { %1451 = vmatpush3.bf16.msra.mxu0 %v2044_v55 }
  0x43   : > { %1464 = vmatprep.subr.bf16.mxu0 %v1777_v5 }
  0xaa   : > { %v529_v23 = vpop.permute.xlu0 %528 }
  0xab   : > { %v692_v31 = vpop.permute.xlu1 %691 }
  0xfd   : > { %v507_v14 = vpop.f32.mrf.mxu0 }
  0xfe   : > { %v508_v16 = vadd.f32 %v1344_v13, %v507_v14 }
  0xff   : > { %v1438_v15 = vpop.f32.mrf.mxu0 }
 0x100   : > { %v514_v21 = vmax.f32 %v508_v16, 0.0 }
 0x101   : > { %v510_v17 = vpop.f32.mrf.mxu0 }
 0x102   : > { %v511_v18 = vadd.f32 %v1344_v13, %v510_v17 }
 0x103   : > { %v1439_v19 = vpop.f32.mrf.mxu0 }
 0x104   : > { %v515_v22 = vmax.f32 %v511_v18, 0.0 }
 0x106   : > { %v516_v24 = vpack.c.bf16 %v515_v22, %v514_v21 }
 0x108   : > { %v533_v26 = vsel %vm530_vm3, %v516_v24, %v529_v23  ;;  %839 = vrot.lane.b32.xlu1 %v516_v24, %s1780_s21  ;;  %684 = vrot.lane.b32.xlu0 %v516_v24, %s1781_s18  ;;  %s416_s21 = scalar_lea.vmem [#allocation3], %s1337_s15 }
 0x109   : > { %1445 = vmatmul.mubr.msk.bf16.vlgmr.msra.gmra.mxu1 %vm553_vm4, %v533_v26  ;;  %s1204_s2 = sshll.u32 %s416_s21, 4  ;;  %s2115_s2 = int_to_ptr.vmem [resolvable:$true] %s1204_s2 }
 0x10a   : > { %1457 = vmatpush3.bf16.msra.mxu1 %v720_v25  ;;  %1460 = vmatprep.mubr.msk.bf16.mxu1 %vm1778_vm0, %v1777_v5 }
 0x10b   : > { %1458 = vmatprep.subr.bf16.mxu1 %v1777_v5 }
 0x10c   : > { %994 = vrot.lane.b32.xlu1 %v516_v24, %s1782_s11  ;;  %846 = vrot.lane.b32.xlu0 %v1625_v27, %s1779_s14  ;;  %s1786_s11 = smov 24  }
 0x10e   : > { %1459 = vmatpush3.bf16.msra.mxu1 %v1628_v28 }
 0x10f   : > { %1472 = vmatprep.subr.bf16.mxu1 %v1777_v5 }
 0x110   : > { %1001 = vrot.lane.b32.xlu0 %v1626_v29, %s1779_s14 }
 0x17a   : > { %v685_v32 = vpop.permute.xlu0 %684  ;;  %v840_v38 = vpop.permute.xlu1 %839 }
 0x17b   : > { %v695_v34 = vsel %vm530_vm3, %v685_v32, %v692_v31 }
 0x17c   : > { %1461 = vmatmul.mubr.msk.bf16.vlgmr.msra.gmra.mxu1 %vm553_vm4, %v695_v34 }
 0x17d   : > { %1473 = vmatpush3.bf16.msra.mxu1 %v875_v33  ;;  %1476 = vmatprep.mubr.msk.bf16.mxu1 %vm1778_vm0, %v1777_v5 }
 0x17e   : > { %1474 = vmatprep.subr.bf16.mxu1 %v1777_v5  ;;  %v847_v37 = vpop.permute.xlu0 %846  ;;  %v995_v43 = vpop.permute.xlu1 %994 }
 0x17f   : > { %v850_v40 = vsel %vm530_vm3, %v840_v38, %v847_v37 }
 0x181   : > { %1475 = vmatpush3.bf16.msra.mxu1 %v1630_v35 }
 0x182   : > { %1488 = vmatprep.subr.bf16.mxu1 %v1777_v5  ;;  %v1002_v42 = vpop.permute.xlu0 %1001 }
 0x183   : > { %v1005_v44 = vsel %vm530_vm3, %v995_v43, %v1002_v42 }
 0x184   : > { %1477 = vmatmul.mubr.msk.bf16.vlgmr.msra.gmra.mxu1 %vm553_vm4, %v850_v40 }
 0x185   : > { %1489 = vmatpush3.bf16.msra.mxu1 %v1030_v39  ;;  %1492 = vmatprep.mubr.msk.bf16.mxu1 %vm1778_vm0, %v1777_v5 }
 0x186   : > { %1490 = vmatprep.subr.bf16.mxu1 %v1777_v5 }
 0x189   : > { %1491 = vmatpush3.bf16.msra.mxu1 %v1632_v41 }
 0x18c   : > { %1493 = vmatmul.mubr.msk.bf16.vlgmr.msra.gmra.mxu1 %vm553_vm4, %v1005_v44 }
 0x1c9   : > { %v594_v46 = vpop.f32.mrf.mxu1 }
 0x1ca   : > { %v595_v47 = vadd.f32 %v1350_v45, %v594_v46 }
 0x1cb   : > { %v1446_v48 = vpop.f32.mrf.mxu1 }
 0x1cc   : > { %v601_v49 = vsel %vm469_vm1, %v595_v47, -inf }
 0x1cd   : > { %602 = vmax.xlane.f32.xlu1 %v601_v49  ;;  %v597_v50 = vpop.f32.mrf.mxu1 }
 0x1ce   : > { %v598_v51 = vadd.f32 %v1350_v45, %v597_v50 }
 0x1cf   : > { %v1447_v52 = vpop.f32.mrf.mxu1 }
 0x1d0   : > { %v604_v53 = vsel %vm469_vm1, %v598_v51, -inf }
 0x1d1   : > { %605 = vmax.xlane.f32.xlu0 %v604_v53 }
 0x23c   : > { %v756_v57 = vpop.f32.mrf.mxu1 }
 0x23d   : > { %v757_v58 = vadd.f32 %v1364_v56, %v756_v57 }
 0x23e   : > { %v1462_v59 = vpop.f32.mrf.mxu1 }
 0x23f   : > { %v763_v60 = vsel %vm469_vm1, %v757_v58, -inf }
 0x240   : > { %764 = vmax.xlane.f32.xlu0 %v763_v60  ;;  %v759_v61 = vpop.f32.mrf.mxu1 }
 0x241   : > { %v760_v62 = vadd.f32 %v1364_v56, %v759_v61 }
 0x242   : > { %v1463_v63 = vpop.f32.mrf.mxu1 }
 0x243   : > { %v766_v1 = vsel %vm469_vm1, %v760_v62, -inf }
 0x244   : > { %767 = vmax.xlane.f32.xlu1 %v766_v1  ;;  %v911_v2 = vpop.f32.mrf.mxu1 }
 0x245   : > { %v2052_v3 = vadd.f32 %v1376_v0, %v911_v2 }
 0x246   : > { %v1478_v4 = vpop.f32.mrf.mxu1 }
 0x247   : > { %v918_v6 = vsel %vm469_vm1, %v2052_v3, -inf }
 0x248   : > { %919 = vmax.xlane.f32.xlu0 %v918_v6  ;;  %v914_v7 = vpop.f32.mrf.mxu1 }
 0x249   : > { %v915_v8 = vadd.f32 %v1376_v0, %v914_v7 }
 0x24a   : > { %v1479_v9 = vpop.f32.mrf.mxu1 }
 0x24b   : > { %v921_v11 = vsel %vm469_vm1, %v915_v8, -inf }
 0x24c   : > { %922 = vmax.xlane.f32.xlu1 %v921_v11  ;;  %v1066_v12 = vpop.f32.mrf.mxu1 }
 0x24d   : > { %v1067_v13 = vadd.f32 %v1388_v10, %v1066_v12 }
 0x24e   : > { %v1494_v14 = vpop.f32.mrf.mxu1 }
 0x24f   : > { %v1073_v15 = vsel %vm469_vm1, %v1067_v13, -inf }
 0x250   : > { %1074 = vmax.xlane.f32.xlu0 %v1073_v15  ;;  %v1069_v16 = vpop.f32.mrf.mxu1 }
 0x251   : > { %v1070_v17 = vadd.f32 %v1388_v10, %v1069_v16 }
 0x252   : > { %v1495_v18 = vpop.f32.mrf.mxu1 }
 0x253   : > { %v1076_v19 = vsel %vm469_vm1, %v1070_v17, -inf }
 0x254   : > { %1077 = vmax.xlane.f32.xlu1 %v1076_v19 }
 0x256   : > { %v603_v20 = vpop.xlane.xlu1 %602 }
 0x257   : > { %v607_v21 = vsub.f32 %v595_v47, %v603_v20 }
 0x259   : > { %v609_v22 = vmul.f32 1.442695, %v607_v21 }
 0x25a   : > { %v606_v23 = vpop.xlane.xlu0 %605 }
 0x25b   : > { %1635 = vpow2.f32 %v609_v22  ;;  %v608_v24 = vsub.f32 %v598_v51, %v606_v23 }
 0x25d   : > { %v611_v25 = vmul.f32 1.442695, %v608_v24 }
 0x25f   : > { %1637 = vpow2.f32 %v611_v25 }
 0x265   : > { %786 = vrot.lane.b32.xlu1 %v2044_v55, %s1783_s12 }
 0x266   : > { %788 = vrot.lane.b32.xlu0 %v2040_v54, %s1783_s12  ;;  %s2119_s12 = scalar_lea.sflag [#allocation4], %s414_s29 }
 0x268   : > { %v1636_v26 = vpop.eup %1635 }
 0x269   : > { %943 = vrot.lane.b32.xlu1 %v2040_v54, %s1781_s18  ;;  %v613_v27 = vsel %vm469_vm1, %v1636_v26, 0.0 }
 0x26c   : > { %v1638_v28 = vpop.eup %1637 }
 0x26d   : > { %v616_v29 = vsel %vm469_vm1, %v1638_v28, 0.0 }
 0x285   : > { %614 = vadd.xlane.f32.xlu0 %v613_v27 }
 0x28d   : > { %617 = vadd.xlane.f32.xlu1 %v616_v29 }
 0x2c9   : > { %v765_v30 = vpop.xlane.xlu0 %764 }
 0x2ca   : > { %v769_v31 = vsub.f32 %v757_v58, %v765_v30 }
 0x2cc   : > { %v771_v32 = vmul.f32 1.442695, %v769_v31 }
 0x2cd   : > { %v768_v33 = vpop.xlane.xlu1 %767 }
 0x2ce   : > { %1639 = vpow2.f32 %v771_v32  ;;  %v770_v34 = vsub.f32 %v760_v62, %v768_v33 }
 0x2d0   : > { %v773_v35 = vmul.f32 1.442695, %v770_v34 }
 0x2d1   : > { %v920_v50 = vpop.xlane.xlu0 %919 }
 0x2d2   : > { %1641 = vpow2.f32 %v773_v35  ;;  %v924_v51 = vsub.f32 %v2052_v3, %v920_v50 }
 0x2d4   : > { %v926_v53 = vmul.f32 1.442695, %v924_v51 }
 0x2d5   : > { %v923_v36 = vpop.xlane.xlu1 %922 }
 0x2d6   : > { %v925_v37 = vsub.f32 %v915_v8, %v923_v36 }
 0x2d8   : > { %v928_v38 = vmul.f32 1.442695, %v925_v37 }
 0x2d9   : > { %v1075_v52 = vpop.xlane.xlu0 %1074 }
 0x2da   : > { %1643 = vpow2.f32 %v928_v38  ;;  %v1079_v56 = vsub.f32 %v1067_v13, %v1075_v52 }
 0x2db   : > { %v1640_v39 = vpop.eup %1639 }
 0x2dc   : > { %v775_v40 = vsel %vm469_vm1, %v1640_v39, 0.0  ;;  %v1081_v57 = vmul.f32 1.442695, %v1079_v56 }
 0x2dd   : > { %v1078_v41 = vpop.xlane.xlu1 %1077  ;;  %776 = vadd.xlane.f32.xlu0 %v775_v40  ;;  %v789_v59 = vpop.permute.xlu0 %788 }
 0x2de   : > { %v1080_v42 = vsub.f32 %v1070_v17, %v1078_v41 }
 0x2df   : > { %v1642_v43 = vpop.eup %1641 }
 0x2e0   : > { %v1083_v44 = vmul.f32 1.442695, %v1080_v42  ;;  %v778_v45 = vsel %vm469_vm1, %v1642_v43, 0.0 }
 0x2e1   : > { %779 = vadd.xlane.f32.xlu1 %v778_v45  ;;  %v787_v58 = vpop.permute.xlu1 %786 }
 0x2e2   : > { %1645 = vpow2.f32 %v1083_v44 }
 0x2e3   : > { %1647 = vpow2.f32 %v926_v53 }
 0x2e4   : > { %1649 = vpow2.f32 %v1081_v57 }
 0x2e5   : > { %v944_v61 = vpop.permute.xlu1 %943 }
 0x2e7   : > { %v2068_v46 = vpop.eup %1643 }
 0x2e8   : > { %v933_v47 = vsel %vm469_vm1, %v2068_v46, 0.0 }
 0x2e9   : > { %934 = vadd.xlane.f32.xlu1 %v933_v47 }
 0x2ef   : > { %v2072_v48 = vpop.eup %1645 }
 0x2f0   : > { %v1088_v49 = vsel %vm469_vm1, %v2072_v48, 0.0  ;;  %v1648_v60 = vpop.eup %1647 }
 0x2f1   : > { %1089 = vadd.xlane.f32.xlu1 %v1088_v49  ;;  %v930_v62 = vsel %vm469_vm1, %v1648_v60, 0.0  ;;  %v1650_v63 = vpop.eup %1649 }
 0x2f2   : > { %v1085_v1 = vsel %vm469_vm1, %v1650_v63, 0.0 }
 0x2f3   : > { %941 = vrot.lane.b32.xlu0 %v2044_v55, %s1781_s18  ;;  %s1785_s18 = smov 8  }
 0x302   : > { %1098 = vrot.lane.b32.xlu1 %v2040_v54, %s1784_s6 }
 0x30e   : > { %v615_v0 = vpop.xlane.xlu0 %614 }
 0x30f   : > { %1651 = vrcp.f32 %v615_v0 }
 0x312   : > { %931 = vadd.xlane.f32.xlu0 %v930_v62 }
 0x316   : > { %v618_v2 = vpop.xlane.xlu1 %617  ;;  %1086 = vadd.xlane.f32.xlu0 %v1085_v1 }
 0x317   : > { %1653 = vrcp.f32 %v618_v2 }
 0x31c   : > { %v1652_v3 = vpop.eup %1651 }
 0x31d   : > { %v621_v6 = vmul.f32 %v1652_v3, %v1636_v26 }
 0x324   : > { %v1654_v4 = vpop.eup %1653 }
 0x325   : > { %v622_v54 = vmul.f32 %v1654_v4, %v1638_v28 }
 0x327   : > { %v623_v7 = vpack.c.bf16 %v622_v54, %v621_v6 }
 0x329   : > { %1453 = vmatmul.mubr.msk.bf16.vlgmr.msra.gmra.mxu0 %vm469_vm1, %v623_v7 }
 0x32a   : > { %1465 = vmatpush3.bf16.msra.mxu0 %v789_v59  ;;  %1468 = vmatprep.mubr.msk.bf16.mxu0 %vm1778_vm0, %v1777_v5 }
 0x32b   : > { %1466 = vmatprep.subr.bf16.mxu0 %v1777_v5 }
 0x32c   : > { %1096 = vrot.lane.b32.xlu0 %v2044_v55, %s1784_s6  ;;  %s1667_s6 = scalar_lea.vmem %s2115_s2, 128 }
 0x32d   : > { %p1668_p5 = scmp.ne.s32.totalorder %s2115_s2, %s1667_s6 }
 0x32e   : > { %1467 = vmatpush3.bf16.msra.mxu0 %v787_v58 }
 0x32f   : > { %1480 = vmatprep.subr.bf16.mxu0 %v1777_v5  ;;  %p1669_p6 = pnand %p1668_p5, %p1909_p10 }
 0x331   : > { %p1670_p7 = pneg %p1669_p6 }
 0x366   : > { %v777_v8 = vpop.xlane.xlu0 %776 }
 0x367   : > { %1655 = vrcp.f32 %v777_v8 }
 0x36a   : > { %v780_v9 = vpop.xlane.xlu1 %779  ;;  %v942_v55 = vpop.permute.xlu0 %941 }
 0x36b   : > { %1657 = vrcp.f32 %v780_v9 }
 0x372   : > { %v935_v15 = vpop.xlane.xlu1 %934 }
 0x373   : > { %1659 = vrcp.f32 %v935_v15 }
 0x374   : > { %v1656_v10 = vpop.eup %1655 }
 0x375   : > { %v783_v12 = vmul.f32 %v1656_v10, %v1640_v39 }
 0x378   : > { %v1658_v11 = vpop.eup %1657 }
 0x379   : > { %v784_v13 = vmul.f32 %v1658_v11, %v1642_v43 }
 0x37a   : > { %v1090_v17 = vpop.xlane.xlu1 %1089 }
 0x37b   : > { %v785_v14 = vpack.c.bf16 %v784_v13, %v783_v12 }
 0x37d   : > { %1469 = vmatmul.mubr.msk.bf16.vlgmr.msra.gmra.mxu0 %vm469_vm1, %v785_v14 }
 0x37e   : > { %1481 = vmatpush3.bf16.msra.mxu0 %v944_v61  ;;  %1484 = vmatprep.mubr.msk.bf16.mxu0 %vm1778_vm0, %v1777_v5  ;;  %v1099_v23 = vpop.permute.xlu1 %1098 }
 0x37f   : > { %1482 = vmatprep.subr.bf16.mxu0 %v1777_v5 }
 0x380   : > { %v1660_v19 = vpop.eup %1659 }
 0x381   : > { %v939_v22 = vmul.f32 %v1660_v19, %v2068_v46 }
 0x382   : > { %1483 = vmatpush3.bf16.msra.mxu0 %v942_v55 }
 0x383   : > { %1496 = vmatprep.subr.bf16.mxu0 %v1777_v5 }
 0x39b   : > { %v932_v16 = vpop.xlane.xlu0 %931 }
 0x39c   : > { %1661 = vrcp.f32 %v932_v16 }
 0x39f   : > { %v1087_v18 = vpop.xlane.xlu0 %1086 }
 0x3a0   : > { %1663 = vrcp.f32 %v1087_v18 }
 0x3a1   : > { %1665 = vrcp.f32 %v1090_v17 }
 0x3a3   : > { %v1097_v27 = vpop.permute.xlu0 %1096 }
 0x3a9   : > { %v1662_v20 = vpop.eup %1661 }
 0x3aa   : > { %v938_v21 = vmul.f32 %v1662_v20, %v1648_v60 }
 0x3ac   : > { %v940_v24 = vpack.c.bf16 %v939_v22, %v938_v21 }
 0x3ad   : > { %v1664_v25 = vpop.eup %1663 }
 0x3ae   : > { %1485 = vmatmul.mubr.msk.bf16.vlgmr.msra.gmra.mxu0 %vm469_vm1, %v940_v24  ;;  %v1666_v26 = vpop.eup %1665  ;;  %v1093_v28 = vmul.f32 %v1664_v25, %v1650_v63 }
 0x3af   : > { %1497 = vmatpush3.bf16.msra.mxu0 %v1099_v23  ;;  %1500 = vmatprep.mubr.msk.bf16.mxu0 %vm1778_vm0, %v1777_v5  ;;  %v1094_v29 = vmul.f32 %v1666_v26, %v2072_v48 }
 0x3b0   : > { %1498 = vmatprep.subr.bf16.mxu0 %v1777_v5 }
 0x3b1   : > { %v1095_v30 = vpack.c.bf16 %v1094_v29, %v1093_v28 }
 0x3b3   : > { %1499 = vmatpush3.bf16.msra.mxu0 %v1097_v27 }
 0x3b6   : > { %1501 = vmatmul.mubr.msk.bf16.vlgmr.msra.gmra.mxu0 %vm469_vm1, %v1095_v30 }
 0x3e9   : > { %v673_v31 = vpop.f32.mrf.mxu0 }
 0x3eb   : > { %v1454_v32 = vpop.f32.mrf.mxu0 }
 0x3ed   : > { %v676_v33 = vpop.f32.mrf.mxu0 }
 0x3ef   : > { %v1455_v34 = vpop.f32.mrf.mxu0 }
 0x43d   : > { %v829_v35 = vpop.f32.mrf.mxu0 }
 0x43f   : > { %v1470_v36 = vpop.f32.mrf.mxu0 }
 0x441   : > { %v832_v37 = vpop.f32.mrf.mxu0 }
 0x442   : > { %v1603_v38 = vpack.i.bf16 %v832_v37, %v829_v35 }
 0x443   : > { %v1471_v39 = vpop.f32.mrf.mxu0 }
 0x444   : > { %1604 = vrot.lane.b32.xlu1 %v1603_v38, %s1785_s18  ;;  %s1787_s18 = smov [#allocation3]  }
 0x46e   : > { %v984_v5 = vpop.f32.mrf.mxu0 }
 0x470   : > { %v1486_v40 = vpop.f32.mrf.mxu0 }
 0x472   : > { %v987_v41 = vpop.f32.mrf.mxu0 }
 0x473   : > { %v1608_v42 = vpack.i.bf16 %v987_v41, %v984_v5 }
 0x474   : > { %v1487_v43 = vpop.f32.mrf.mxu0 }
 0x475   : > { %1609 = vrot.lane.b32.xlu0 %v1608_v42, %s1779_s14  ;;  %s1398_s14 = sshll.u32 %s1201_s16, 6 }
 0x476   : > { %v1139_v44 = vpop.f32.mrf.mxu0  ;;  %s2113_s17 = scalar_lea.hbm %s2183_s7, %s1398_s14 }
 0x478   : > { %v1502_v45 = vpop.f32.mrf.mxu0 }
 0x47a   : > { %v1142_v46 = vpop.f32.mrf.mxu0 }
 0x47b   : > { %v1613_v47 = vpack.i.bf16 %v1142_v46, %v1139_v44 }
 0x47c   : > { %v1503_v48 = vpop.f32.mrf.mxu0 }
 0x47d   : > { %1614 = vrot.lane.b32.xlu1 %v1613_v47, %s1786_s11  ;;  %s1671_s11 = sshll.u32 %s1787_s18, 4  ;;  %s1672_s11 = int_to_ptr.vmem [resolvable:$false] %s1671_s11 }
 0x47e   : > { %s1673_s15 = scalar_lea.vmem %s1672_s11, 256  ;;  %p1674_p8 = scmp.lt.s32.totalorder %s2115_s2, %s1672_s11 }
 0x47f   : > { %p1675_p9 = scmp.lt.s32.totalorder %s1673_s15, %s1667_s6 }
 0x481   : > { %p1676_p11 = por %p1675_p9, %p1674_p8 }
 0x483   : > { %p1677_p13 = pnand %p1676_p11, %p1670_p7 }
 0x4b6   : > { %v1605_v49 = vpop.permute.xlu1 %1604 }
 0x4b7   : > { %v1607_v51 = vunpack.i.h.bf16 %v1605_v49  ;;  %v1606_v52 = vunpack.i.l.bf16 %v1605_v49 }
 0x4b9   : > { %v1172_v58 = vsel %vm1170_vm5, %v676_v33, %v1607_v51  ;;  %v1171_v59 = vsel %vm1170_vm5, %v673_v31, %v1606_v52 }
 0x4e7   : > { %v1610_v50 = vpop.permute.xlu0 %1609 }
 0x4e8   : > { %v1612_v53 = vunpack.i.h.bf16 %v1610_v50  ;;  %v1611_v56 = vunpack.i.l.bf16 %v1610_v50 }
 0x4ea   : > { %v1174_v62 = vsel %vm530_vm3, %v1172_v58, %v1612_v53  ;;  %v1173_v63 = vsel %vm530_vm3, %v1171_v59, %v1611_v56 }
 0x4ef   : > { %v1615_v57 = vpop.permute.xlu1 %1614 }
 0x4f0   : > { %v1617_v60 = vunpack.i.h.bf16 %v1615_v57  ;;  %v1616_v61 = vunpack.i.l.bf16 %v1615_v57 }
 0x4f2   : > { %v1175_v0 = vsel %vm553_vm4, %v1173_v63, %v1616_v61  ;;  %v1176_v1 = vsel %vm553_vm4, %v1174_v62, %v1617_v60 }
 0x4f3   : > { %v1403_v2 = vpack.c.bf16 %v1175_v0, %v1175_v0  ;;  %v1404_v3 = vpack.c.bf16 %v1176_v1, %v1176_v1 }
 0x4f5   : > { %1186 = vst.msk [vmem:[%s416_s21] sm:$0xf] %vm1185_vm6, %v1403_v2  ;;  %1187 = vst.msk [vmem:[%s416_s21 + $0x4] sm:$0xf] %vm1185_vm6, %v1404_v3 }
 0x4f6   : > { %1680 = shalt.err (!%p1677_p13)
}
 0x4f7   : > { %s1681_s29 = scalar_lea.hbm %s2113_s17, 128  ;;  %s1685_s14 = scalar_lea.hbm %s2183_s7, 512 }
 0x4f8   : > { %p1682_p0 = scmp.ne.s32.totalorder %s2113_s17, %s1681_s29  ;;  %p1686_p3 = scmp.lt.s32.totalorder %s2113_s17, %s2183_s7 }
 0x4f9   : > { %p1687_p4 = scmp.lt.s32.totalorder %s1685_s14, %s1681_s29 }
 0x4fa   : > { %p1683_p1 = pnand %p1682_p0, %p1909_p10 }
 0x4fb   : > { %p1688_p5 = por %p1687_p4, %p1686_p3 }
 0x4fc   : > { %p1684_p2 = pneg %p1683_p1 }
 0x4fe   : > { %p1689_p6 = pnand %p1688_p5, %p1684_p2 }
 0x500   : > { %1692 = shalt.err (!%p1689_p6)
}
 0x501   : > { %s1788_s20 = smov 64   ;;  %s1789_s6 = smov 4  }
 0x502   : > { %1504 = dma.vmem_to_hbm [thread:$0]  (%p1909_p10), %s2115_s2, 128, %s2113_s17, %s2119_s12, %s1788_s20, %s1788_s20, %s1789_s6  }
 0x503 PF: > { %p1510_p7 = scmp.ge.s32.totalorder %s1775_s10, 2  ;;  %s1219_s18 = sand.u32 1, %s1739_s24  }
 0x504   : > { %s1220_s11 = scalar_lea.sflag [#allocation4], %s1219_s18 }
 0x505   : > { %p1507_p8 = pnand %p1510_p7, %p1916_p12 }
 0x507   : > { %p1508_p9 = pneg %p1507_p8 }
 0x509   : > { %1734 = dma.done.wait (%p1508_p9), %s1220_s11, 128  }
 0x50a   : > { %1736 = vsyncadd (%p1508_p9), %s1220_s11, 4294967168  ;;  %s20_s10 = sadd.s32 1, %s1775_s10   ;;  %s2195_s22 = sld [smem:[#allocation6_spill]] }
 0x50b   : > { %p17_p11 = scmp.ge.s32.totalorder %s20_s10, 6   ;;  %s2196_s2 = sld [smem:[#allocation7_spill]] }
 0x50c   : > { %s2197_s24 = smov %s1743_s25  ;;  %s2198_s25 = smov %s1747_s26 }
 0x50d   : > { %s2199_s26 = smov %s1914_s23  ;;  %s2200_s27 = smov %s1755_s28 }
 0x50e   : > { %s2201_s28 = smov %s1903_s19  ;;  %s2202_s29 = smov %s1767_s8 }
 0x50f   : > { %s2203_s30 = smov %s1771_s9  ;;  %19 = sbr.rel (!%p17_p11) target bundleno = 9 (0x9), region = 147 }
 0x510   : > { %s2204_s8 = smov %s2195_s22 }
 0x511   : > { %s2205_s9 = smov %s2196_s2 }
 0x514   :  { %1225 = vsyncpa [#allocation4], 1 }
 0x515   :  { %1227 = vsyncpa [#allocation4 + $0x1], 1 }

</bundles_post_ra>
